<compile_context>
chip_gen: v7x
topology: tpu7x:2x2x1
jax: 0.10.0
libtpu: 0.0.40
codegen_flags: <defaults>
</compile_context>

<pallas_src>
import functools

import jax
import jax.numpy as jnp
from jax import lax
from jax.experimental import pallas as pl
from jax.experimental.pallas import tpu as pltpu


def gru_head_kernel(x_ref,
                    wih_ref, whh_ref,
                    b_rz_ref, b_in_ref, b_hn_ref,
                    wout_ref, bout_ref,
                    out_ref):
    # Shapes (all f32):
    #   x_ref:    (TILE_N, S)
    #   wih_ref:  (1, 3H)     input projection (input_size == 1 -> broadcast mul)
    #   whh_ref:  (H, 3H)     fused recurrent weights, gate order r|z|n
    #   b_rz_ref: (1, 2H)     bias_ih + bias_hh for the r and z gates
    #   b_in_ref: (1, H)      bias_ih for the n gate (outside r * (.))
    #   b_hn_ref: (1, H)      bias_hh for the n gate (inside  r * (.))
    #   wout_ref: (H, P), bout_ref: (1, P)
    #   out_ref:  (TILE_N, P)
    tile_n, seq_len = x_ref.shape
    hidden = whh_ref.shape[0]
    h2 = 2 * hidden

    wih = wih_ref[...]        # (1, 3H)
    whh = whh_ref[...]        # (H, 3H)  -- at this H it comfortably stays in VMEM
    b_rz = b_rz_ref[...]      # (1, 2H)
    b_in = b_in_ref[...]      # (1, H)
    b_hn = b_hn_ref[...]      # (1, H)

    def cell(x_t, h):
        # x_t: (TILE_N, 1), h: (TILE_N, H)
        gx = x_t * wih                                               # (TILE_N, 3H)
        gh = jnp.dot(h, whh, preferred_element_type=jnp.float32)     # one MXU push
        rz = jax.nn.sigmoid(gx[:, :h2] + gh[:, :h2] + b_rz)          # r|z in one EUP pass
        r = rz[:, :hidden]
        z = rz[:, hidden:]
        n = jnp.tanh(gx[:, h2:] + b_in + r * (gh[:, h2:] + b_hn))
        return n + z * (h - n)                                       # == (1-z)*n + z*h

    h = jnp.zeros((tile_n, hidden), dtype=jnp.float32)

    unroll = 8
    if seq_len <= 64:
        # Fully unrolled time loop, static column slices (no dynamic lane access).
        x_all = x_ref[...]
        for t in range(seq_len):
            h = cell(x_all[:, t:t + 1], h)
    else:
        # Chunked: one dynamic chunk load per `unroll` steps, static slices inside.
        n_chunks, rem = divmod(seq_len, unroll)

        def chunk_body(c, h):
            start = pl.multiple_of(c * unroll, unroll)
            x_chunk = x_ref[:, pl.ds(start, unroll)]
            for k in range(unroll):
                h = cell(x_chunk[:, k:k + 1], h)
            return h

        h = lax.fori_loop(0, n_chunks, chunk_body, h)
        if rem:
            x_tail = x_ref[:, n_chunks * unroll:]
            for k in range(rem):
                h = cell(x_tail[:, k:k + 1], h)

    out_ref[...] = (jnp.dot(h, wout_ref[...], preferred_element_type=jnp.float32)
                    + bout_ref[...])


def init_params(key, channels, hidden, pred_len):
    """Params matching PyTorch GRUCell + Linear shapes/init ranges, pre-fused."""
    assert channels == 1, "forward() semantics (reshape(-1, seq_len)) imply enc_in == 1"
    H = hidden
    k = 1.0 / jnp.sqrt(H)
    keys = jax.random.split(key, 6)
    weight_ih = jax.random.uniform(keys[0], (3 * H, channels), jnp.float32, -k, k)
    weight_hh = jax.random.uniform(keys[1], (3 * H, H), jnp.float32, -k, k)
    bias_ih = jax.random.uniform(keys[2], (3 * H,), jnp.float32, -k, k)
    bias_hh = jax.random.uniform(keys[3], (3 * H,), jnp.float32, -k, k)
    w_prel = jax.random.uniform(keys[4], (pred_len, H), jnp.float32, -k, k)
    b_prel = jax.random.uniform(keys[5], (pred_len,), jnp.float32, -k, k)

    params = dict(
        wih=weight_ih.T.reshape(1, 3 * H),                       # (1, 3H), r|z|n
        whh=weight_hh.T,                                         # (H, 3H), r|z|n
        b_rz=(bias_ih[:2 * H] + bias_hh[:2 * H]).reshape(1, 2 * H),
        b_in=bias_ih[2 * H:].reshape(1, H),
        b_hn=bias_hh[2 * H:].reshape(1, H),
        wout=w_prel.T,                                           # (H, P)
        bout=b_prel.reshape(1, pred_len),                        # (1, P)
    )
    raw = dict(weight_ih=weight_ih, weight_hh=weight_hh, bias_ih=bias_ih,
               bias_hh=bias_hh, w_prel=w_prel, b_prel=b_prel)
    return params, raw


def _round_up(a, m):
    return (a + m - 1) // m * m


@functools.partial(jax.jit, static_argnames=("seq_len", "pred_len"))
def model_forward(x, params, seq_len, pred_len):
    """x: (batch, seq_len, channels=1). Returns (batch, pred_len, 1)."""
    x2 = x.reshape(-1, seq_len).astype(jnp.float32)          # (N, S)
    N = x2.shape[0]
    H = params["whh"].shape[0]
    H3 = 3 * H

    # Batch tile: multiple of 8 (sublane), capped at 256 (well under 32 MiB scoped
    # VMEM even on v7x, with x/out tiles double-buffered and weights resident).
    tile_n = min(256, _round_up(max(N, 1), 8))
    n_pad = _round_up(N, tile_n)
    if n_pad != N:
        x2 = jnp.pad(x2, ((0, n_pad - N), (0, 0)))
    grid = (n_pad // tile_n,)

    cost = pl.CostEstimate(
        flops=2 * n_pad * seq_len * H * H3 + 2 * n_pad * H * pred_len,
        transcendentals=3 * n_pad * seq_len * H,
        bytes_accessed=4 * (n_pad * seq_len + H * H3 + H3 + 2 * H
                            + H * pred_len + pred_len + n_pad * pred_len),
    )

    def wspec(shape):
        # Weights/biases: same (only) block at every grid step -> stay resident.
        return pl.BlockSpec(shape, lambda i: (0, 0))

    out = pl.pallas_call(
        gru_head_kernel,
        out_shape=jax.ShapeDtypeStruct((n_pad, pred_len), jnp.float32),
        grid=grid,
        in_specs=[
            pl.BlockSpec((tile_n, seq_len), lambda i: (i, 0)),   # x tile per grid step
            wspec((1, H3)),            # wih
            wspec((H, H3)),            # whh
            wspec((1, 2 * H)),         # b_rz
            wspec((1, H)),             # b_in
            wspec((1, H)),             # b_hn
            wspec((H, pred_len)),      # wout
            wspec((1, pred_len)),      # bout
        ],
        out_specs=pl.BlockSpec((tile_n, pred_len), lambda i: (i, 0)),
        compiler_params=pltpu.CompilerParams(
            dimension_semantics=("parallel",)),   # v7x: shard batch tiles over 2 TCs
        cost_estimate=cost,
    )(x2, params["wih"], params["whh"], params["b_rz"], params["b_in"],
      params["b_hn"], params["wout"], params["bout"])

    return out[:N].reshape(-1, pred_len, 1)


def reference_forward(x, raw, seq_len, pred_len, hidden):
    """Pure-JAX replica of the PyTorch forward, for verification."""
    x2 = x.reshape(-1, seq_len).astype(jnp.float32)
    N = x2.shape[0]
    H = hidden
    w_ih, w_hh = raw["weight_ih"], raw["weight_hh"]
    b_ih, b_hh = raw["bias_ih"], raw["bias_hh"]
    h = jnp.zeros((N, H), jnp.float32)
    for i in range(seq_len):
        x_t = x2[:, i:i + 1]
        gi = x_t @ w_ih.T + b_ih
        gh = h @ w_hh.T + b_hh
        r = jax.nn.sigmoid(gi[:, :H] + gh[:, :H])
        z = jax.nn.sigmoid(gi[:, H:2 * H] + gh[:, H:2 * H])
        n = jnp.tanh(gi[:, 2 * H:] + r * gh[:, 2 * H:])
        h = (1.0 - z) * n + z * h
    out = h @ raw["w_prel"].T + raw["b_prel"]
    return out.reshape(-1, pred_len, 1)


if __name__ == "__main__":
    batch, seq_len, channels, hidden, pred_len = 2, 8, 1, 32, 4
    key = jax.random.PRNGKey(0)
    k_x, k_p = jax.random.split(key)
    x = jax.random.normal(k_x, (batch, seq_len, channels), jnp.float32)

    params, raw = init_params(k_p, channels, hidden, pred_len)

    y = model_forward(x, params, seq_len, pred_len)
    y = jax.block_until_ready(y)

    y_ref = reference_forward(x, raw, seq_len, pred_len, hidden)
    assert y.shape == (batch, pred_len, 1)
    assert jnp.allclose(y, y_ref, atol=1e-4, rtol=1e-4), "mismatch vs pure-JAX reference"
    print("KERNEL_OK")
</pallas_src>

<mosaic_0001>
module attributes {stable_mosaic.version = 11 : i64} {
  func.func @gru_head_kernel(%arg0: i32, %arg1: memref<8x8xf32, #tpu.memory_space<vmem>>, %arg2: memref<1x96xf32, #tpu.memory_space<vmem>>, %arg3: memref<32x96xf32, #tpu.memory_space<vmem>>, %arg4: memref<1x64xf32, #tpu.memory_space<vmem>>, %arg5: memref<1x32xf32, #tpu.memory_space<vmem>>, %arg6: memref<1x32xf32, #tpu.memory_space<vmem>>, %arg7: memref<32x4xf32, #tpu.memory_space<vmem>>, %arg8: memref<1x4xf32, #tpu.memory_space<vmem>>, %arg9: memref<8x4xf32, #tpu.memory_space<vmem>>) attributes {dimension_semantics = [#tpu.dimension_semantics<parallel>], iteration_bounds = array<i64: 1>, scalar_prefetch = 0 : i64, scratch_operands = 0 : i64, tpu.core_type = #tpu.core_type<tc>, window_params = [{transform_indices = @transform_0, window_bounds = array<i64: 8, 8>}, {pipeline_mode = #tpu.pipeline_mode<synchronous>, transform_indices = @transform_1, window_bounds = array<i64: 1, 96>}, {pipeline_mode = #tpu.pipeline_mode<synchronous>, transform_indices = @transform_2, window_bounds = array<i64: 32, 96>}, {pipeline_mode = #tpu.pipeline_mode<synchronous>, transform_indices = @transform_3, window_bounds = array<i64: 1, 64>}, {pipeline_mode = #tpu.pipeline_mode<synchronous>, transform_indices = @transform_4, window_bounds = array<i64: 1, 32>}, {pipeline_mode = #tpu.pipeline_mode<synchronous>, transform_indices = @transform_5, window_bounds = array<i64: 1, 32>}, {pipeline_mode = #tpu.pipeline_mode<synchronous>, transform_indices = @transform_6, window_bounds = array<i64: 32, 4>}, {pipeline_mode = #tpu.pipeline_mode<synchronous>, transform_indices = @transform_7, window_bounds = array<i64: 1, 4>}, {transform_indices = @transform_8, window_bounds = array<i64: 8, 4>}]} {
    %c0 = arith.constant 0 : index
    %c0_0 = arith.constant 0 : index
    %0 = vector.load %arg2[%c0, %c0_0] : memref<1x96xf32, #tpu.memory_space<vmem>>, vector<1x96xf32>
    %c0_1 = arith.constant 0 : index
    %c0_2 = arith.constant 0 : index
    %1 = vector.load %arg3[%c0_1, %c0_2] : memref<32x96xf32, #tpu.memory_space<vmem>>, vector<32x96xf32>
    %c0_3 = arith.constant 0 : index
    %c0_4 = arith.constant 0 : index
    %2 = vector.load %arg4[%c0_3, %c0_4] : memref<1x64xf32, #tpu.memory_space<vmem>>, vector<1x64xf32>
    %c0_5 = arith.constant 0 : index
    %c0_6 = arith.constant 0 : index
    %3 = vector.load %arg5[%c0_5, %c0_6] : memref<1x32xf32, #tpu.memory_space<vmem>>, vector<1x32xf32>
    %c0_7 = arith.constant 0 : index
    %c0_8 = arith.constant 0 : index
    %4 = vector.load %arg6[%c0_7, %c0_8] : memref<1x32xf32, #tpu.memory_space<vmem>>, vector<1x32xf32>
    %cst = arith.constant 0.000000e+00 : f32
    %5 = vector.broadcast %cst : f32 to vector<8x32xf32>
    %c0_9 = arith.constant 0 : index
    %c0_10 = arith.constant 0 : index
    %6 = vector.load %arg1[%c0_9, %c0_10] : memref<8x8xf32, #tpu.memory_space<vmem>>, vector<8x8xf32>
    %7 = vector.extract_strided_slice %6 {offsets = [0, 0], sizes = [8, 1], strides = [1, 1]} : vector<8x8xf32> to vector<8x1xf32>
    %8 = vector.broadcast %7 : vector<8x1xf32> to vector<8x96xf32>
    %9 = vector.broadcast %0 : vector<1x96xf32> to vector<8x96xf32>
    %10 = arith.mulf %8, %9 : vector<8x96xf32>
    %cst_11 = arith.constant dense<0.000000e+00> : vector<8x96xf32>
    %11 = tpu.matmul %5, %1, %cst_11 {dimension_numbers = #tpu.dot_dimension_numbers<[1], [0], [0], [1], [0, 0, 1, 1], [], []>} : vector<8x32xf32>, vector<32x96xf32>, vector<8x96xf32> -> vector<8x96xf32>
    %12 = vector.extract_strided_slice %10 {offsets = [0, 0], sizes = [8, 64], strides = [1, 1]} : vector<8x96xf32> to vector<8x64xf32>
    %13 = vector.extract_strided_slice %11 {offsets = [0, 0], sizes = [8, 64], strides = [1, 1]} : vector<8x96xf32> to vector<8x64xf32>
    %14 = arith.addf %12, %13 : vector<8x64xf32>
    %15 = vector.broadcast %2 : vector<1x64xf32> to vector<8x64xf32>
    %16 = arith.addf %14, %15 : vector<8x64xf32>
    %17 = arith.negf %16 : vector<8x64xf32>
    %18 = math.exp %17 : vector<8x64xf32>
    %cst_12 = arith.constant 1.000000e+00 : f32
    %19 = vector.broadcast %cst_12 : f32 to vector<8x64xf32>
    %20 = arith.addf %19, %18 : vector<8x64xf32>
    %21 = arith.divf %19, %20 : vector<8x64xf32>
    %22 = vector.extract_strided_slice %21 {offsets = [0, 0], sizes = [8, 32], strides = [1, 1]} : vector<8x64xf32> to vector<8x32xf32>
    %23 = vector.extract_strided_slice %21 {offsets = [0, 32], sizes = [8, 32], strides = [1, 1]} : vector<8x64xf32> to vector<8x32xf32>
    %24 = vector.extract_strided_slice %10 {offsets = [0, 64], sizes = [8, 32], strides = [1, 1]} : vector<8x96xf32> to vector<8x32xf32>
    %25 = vector.broadcast %3 : vector<1x32xf32> to vector<8x32xf32>
    %26 = arith.addf %24, %25 : vector<8x32xf32>
    %27 = vector.extract_strided_slice %11 {offsets = [0, 64], sizes = [8, 32], strides = [1, 1]} : vector<8x96xf32> to vector<8x32xf32>
    %28 = vector.broadcast %4 : vector<1x32xf32> to vector<8x32xf32>
    %29 = arith.addf %27, %28 : vector<8x32xf32>
    %30 = arith.mulf %22, %29 : vector<8x32xf32>
    %31 = arith.addf %26, %30 : vector<8x32xf32>
    %32 = math.tanh %31 : vector<8x32xf32>
    %33 = arith.subf %5, %32 : vector<8x32xf32>
    %34 = arith.mulf %23, %33 : vector<8x32xf32>
    %35 = arith.addf %32, %34 : vector<8x32xf32>
    %36 = vector.extract_strided_slice %6 {offsets = [0, 1], sizes = [8, 1], strides = [1, 1]} : vector<8x8xf32> to vector<8x1xf32>
    %37 = vector.broadcast %36 : vector<8x1xf32> to vector<8x96xf32>
    %38 = vector.broadcast %0 : vector<1x96xf32> to vector<8x96xf32>
    %39 = arith.mulf %37, %38 : vector<8x96xf32>
    %cst_13 = arith.constant dense<0.000000e+00> : vector<8x96xf32>
    %40 = tpu.matmul %35, %1, %cst_13 {dimension_numbers = #tpu.dot_dimension_numbers<[1], [0], [0], [1], [0, 0, 1, 1], [], []>} : vector<8x32xf32>, vector<32x96xf32>, vector<8x96xf32> -> vector<8x96xf32>
    %41 = vector.extract_strided_slice %39 {offsets = [0, 0], sizes = [8, 64], strides = [1, 1]} : vector<8x96xf32> to vector<8x64xf32>
    %42 = vector.extract_strided_slice %40 {offsets = [0, 0], sizes = [8, 64], strides = [1, 1]} : vector<8x96xf32> to vector<8x64xf32>
    %43 = arith.addf %41, %42 : vector<8x64xf32>
    %44 = vector.broadcast %2 : vector<1x64xf32> to vector<8x64xf32>
    %45 = arith.addf %43, %44 : vector<8x64xf32>
    %46 = arith.negf %45 : vector<8x64xf32>
    %47 = math.exp %46 : vector<8x64xf32>
    %cst_14 = arith.constant 1.000000e+00 : f32
    %48 = vector.broadcast %cst_14 : f32 to vector<8x64xf32>
    %49 = arith.addf %48, %47 : vector<8x64xf32>
    %50 = arith.divf %48, %49 : vector<8x64xf32>
    %51 = vector.extract_strided_slice %50 {offsets = [0, 0], sizes = [8, 32], strides = [1, 1]} : vector<8x64xf32> to vector<8x32xf32>
    %52 = vector.extract_strided_slice %50 {offsets = [0, 32], sizes = [8, 32], strides = [1, 1]} : vector<8x64xf32> to vector<8x32xf32>
    %53 = vector.extract_strided_slice %39 {offsets = [0, 64], sizes = [8, 32], strides = [1, 1]} : vector<8x96xf32> to vector<8x32xf32>
    %54 = vector.broadcast %3 : vector<1x32xf32> to vector<8x32xf32>
    %55 = arith.addf %53, %54 : vector<8x32xf32>
    %56 = vector.extract_strided_slice %40 {offsets = [0, 64], sizes = [8, 32], strides = [1, 1]} : vector<8x96xf32> to vector<8x32xf32>
    %57 = vector.broadcast %4 : vector<1x32xf32> to vector<8x32xf32>
    %58 = arith.addf %56, %57 : vector<8x32xf32>
    %59 = arith.mulf %51, %58 : vector<8x32xf32>
    %60 = arith.addf %55, %59 : vector<8x32xf32>
    %61 = math.tanh %60 : vector<8x32xf32>
    %62 = arith.subf %35, %61 : vector<8x32xf32>
    %63 = arith.mulf %52, %62 : vector<8x32xf32>
    %64 = arith.addf %61, %63 : vector<8x32xf32>
    %65 = vector.extract_strided_slice %6 {offsets = [0, 2], sizes = [8, 1], strides = [1, 1]} : vector<8x8xf32> to vector<8x1xf32>
    %66 = vector.broadcast %65 : vector<8x1xf32> to vector<8x96xf32>
    %67 = vector.broadcast %0 : vector<1x96xf32> to vector<8x96xf32>
    %68 = arith.mulf %66, %67 : vector<8x96xf32>
    %cst_15 = arith.constant dense<0.000000e+00> : vector<8x96xf32>
    %69 = tpu.matmul %64, %1, %cst_15 {dimension_numbers = #tpu.dot_dimension_numbers<[1], [0], [0], [1], [0, 0, 1, 1], [], []>} : vector<8x32xf32>, vector<32x96xf32>, vector<8x96xf32> -> vector<8x96xf32>
    %70 = vector.extract_strided_slice %68 {offsets = [0, 0], sizes = [8, 64], strides = [1, 1]} : vector<8x96xf32> to vector<8x64xf32>
    %71 = vector.extract_strided_slice %69 {offsets = [0, 0], sizes = [8, 64], strides = [1, 1]} : vector<8x96xf32> to vector<8x64xf32>
    %72 = arith.addf %70, %71 : vector<8x64xf32>
    %73 = vector.broadcast %2 : vector<1x64xf32> to vector<8x64xf32>
    %74 = arith.addf %72, %73 : vector<8x64xf32>
    %75 = arith.negf %74 : vector<8x64xf32>
    %76 = math.exp %75 : vector<8x64xf32>
    %cst_16 = arith.constant 1.000000e+00 : f32
    %77 = vector.broadcast %cst_16 : f32 to vector<8x64xf32>
    %78 = arith.addf %77, %76 : vector<8x64xf32>
    %79 = arith.divf %77, %78 : vector<8x64xf32>
    %80 = vector.extract_strided_slice %79 {offsets = [0, 0], sizes = [8, 32], strides = [1, 1]} : vector<8x64xf32> to vector<8x32xf32>
    %81 = vector.extract_strided_slice %79 {offsets = [0, 32], sizes = [8, 32], strides = [1, 1]} : vector<8x64xf32> to vector<8x32xf32>
    %82 = vector.extract_strided_slice %68 {offsets = [0, 64], sizes = [8, 32], strides = [1, 1]} : vector<8x96xf32> to vector<8x32xf32>
    %83 = vector.broadcast %3 : vector<1x32xf32> to vector<8x32xf32>
    %84 = arith.addf %82, %83 : vector<8x32xf32>
    %85 = vector.extract_strided_slice %69 {offsets = [0, 64], sizes = [8, 32], strides = [1, 1]} : vector<8x96xf32> to vector<8x32xf32>
    %86 = vector.broadcast %4 : vector<1x32xf32> to vector<8x32xf32>
    %87 = arith.addf %85, %86 : vector<8x32xf32>
    %88 = arith.mulf %80, %87 : vector<8x32xf32>
    %89 = arith.addf %84, %88 : vector<8x32xf32>
    %90 = math.tanh %89 : vector<8x32xf32>
    %91 = arith.subf %64, %90 : vector<8x32xf32>
    %92 = arith.mulf %81, %91 : vector<8x32xf32>
    %93 = arith.addf %90, %92 : vector<8x32xf32>
    %94 = vector.extract_strided_slice %6 {offsets = [0, 3], sizes = [8, 1], strides = [1, 1]} : vector<8x8xf32> to vector<8x1xf32>
    %95 = vector.broadcast %94 : vector<8x1xf32> to vector<8x96xf32>
    %96 = vector.broadcast %0 : vector<1x96xf32> to vector<8x96xf32>
    %97 = arith.mulf %95, %96 : vector<8x96xf32>
    %cst_17 = arith.constant dense<0.000000e+00> : vector<8x96xf32>
    %98 = tpu.matmul %93, %1, %cst_17 {dimension_numbers = #tpu.dot_dimension_numbers<[1], [0], [0], [1], [0, 0, 1, 1], [], []>} : vector<8x32xf32>, vector<32x96xf32>, vector<8x96xf32> -> vector<8x96xf32>
    %99 = vector.extract_strided_slice %97 {offsets = [0, 0], sizes = [8, 64], strides = [1, 1]} : vector<8x96xf32> to vector<8x64xf32>
    %100 = vector.extract_strided_slice %98 {offsets = [0, 0], sizes = [8, 64], strides = [1, 1]} : vector<8x96xf32> to vector<8x64xf32>
    %101 = arith.addf %99, %100 : vector<8x64xf32>
    %102 = vector.broadcast %2 : vector<1x64xf32> to vector<8x64xf32>
    %103 = arith.addf %101, %102 : vector<8x64xf32>
    %104 = arith.negf %103 : vector<8x64xf32>
    %105 = math.exp %104 : vector<8x64xf32>
    %cst_18 = arith.constant 1.000000e+00 : f32
    %106 = vector.broadcast %cst_18 : f32 to vector<8x64xf32>
    %107 = arith.addf %106, %105 : vector<8x64xf32>
    %108 = arith.divf %106, %107 : vector<8x64xf32>
    %109 = vector.extract_strided_slice %108 {offsets = [0, 0], sizes = [8, 32], strides = [1, 1]} : vector<8x64xf32> to vector<8x32xf32>
    %110 = vector.extract_strided_slice %108 {offsets = [0, 32], sizes = [8, 32], strides = [1, 1]} : vector<8x64xf32> to vector<8x32xf32>
    %111 = vector.extract_strided_slice %97 {offsets = [0, 64], sizes = [8, 32], strides = [1, 1]} : vector<8x96xf32> to vector<8x32xf32>
    %112 = vector.broadcast %3 : vector<1x32xf32> to vector<8x32xf32>
    %113 = arith.addf %111, %112 : vector<8x32xf32>
    %114 = vector.extract_strided_slice %98 {offsets = [0, 64], sizes = [8, 32], strides = [1, 1]} : vector<8x96xf32> to vector<8x32xf32>
    %115 = vector.broadcast %4 : vector<1x32xf32> to vector<8x32xf32>
    %116 = arith.addf %114, %115 : vector<8x32xf32>
    %117 = arith.mulf %109, %116 : vector<8x32xf32>
    %118 = arith.addf %113, %117 : vector<8x32xf32>
    %119 = math.tanh %118 : vector<8x32xf32>
    %120 = arith.subf %93, %119 : vector<8x32xf32>
    %121 = arith.mulf %110, %120 : vector<8x32xf32>
    %122 = arith.addf %119, %121 : vector<8x32xf32>
    %123 = vector.extract_strided_slice %6 {offsets = [0, 4], sizes = [8, 1], strides = [1, 1]} : vector<8x8xf32> to vector<8x1xf32>
    %124 = vector.broadcast %123 : vector<8x1xf32> to vector<8x96xf32>
    %125 = vector.broadcast %0 : vector<1x96xf32> to vector<8x96xf32>
    %126 = arith.mulf %124, %125 : vector<8x96xf32>
    %cst_19 = arith.constant dense<0.000000e+00> : vector<8x96xf32>
    %127 = tpu.matmul %122, %1, %cst_19 {dimension_numbers = #tpu.dot_dimension_numbers<[1], [0], [0], [1], [0, 0, 1, 1], [], []>} : vector<8x32xf32>, vector<32x96xf32>, vector<8x96xf32> -> vector<8x96xf32>
    %128 = vector.extract_strided_slice %126 {offsets = [0, 0], sizes = [8, 64], strides = [1, 1]} : vector<8x96xf32> to vector<8x64xf32>
    %129 = vector.extract_strided_slice %127 {offsets = [0, 0], sizes = [8, 64], strides = [1, 1]} : vector<8x96xf32> to vector<8x64xf32>
    %130 = arith.addf %128, %129 : vector<8x64xf32>
    %131 = vector.broadcast %2 : vector<1x64xf32> to vector<8x64xf32>
    %132 = arith.addf %130, %131 : vector<8x64xf32>
    %133 = arith.negf %132 : vector<8x64xf32>
    %134 = math.exp %133 : vector<8x64xf32>
    %cst_20 = arith.constant 1.000000e+00 : f32
    %135 = vector.broadcast %cst_20 : f32 to vector<8x64xf32>
    %136 = arith.addf %135, %134 : vector<8x64xf32>
    %137 = arith.divf %135, %136 : vector<8x64xf32>
    %138 = vector.extract_strided_slice %137 {offsets = [0, 0], sizes = [8, 32], strides = [1, 1]} : vector<8x64xf32> to vector<8x32xf32>
    %139 = vector.extract_strided_slice %137 {offsets = [0, 32], sizes = [8, 32], strides = [1, 1]} : vector<8x64xf32> to vector<8x32xf32>
    %140 = vector.extract_strided_slice %126 {offsets = [0, 64], sizes = [8, 32], strides = [1, 1]} : vector<8x96xf32> to vector<8x32xf32>
    %141 = vector.broadcast %3 : vector<1x32xf32> to vector<8x32xf32>
    %142 = arith.addf %140, %141 : vector<8x32xf32>
    %143 = vector.extract_strided_slice %127 {offsets = [0, 64], sizes = [8, 32], strides = [1, 1]} : vector<8x96xf32> to vector<8x32xf32>
    %144 = vector.broadcast %4 : vector<1x32xf32> to vector<8x32xf32>
    %145 = arith.addf %143, %144 : vector<8x32xf32>
    %146 = arith.mulf %138, %145 : vector<8x32xf32>
    %147 = arith.addf %142, %146 : vector<8x32xf32>
    %148 = math.tanh %147 : vector<8x32xf32>
    %149 = arith.subf %122, %148 : vector<8x32xf32>
    %150 = arith.mulf %139, %149 : vector<8x32xf32>
    %151 = arith.addf %148, %150 : vector<8x32xf32>
    %152 = vector.extract_strided_slice %6 {offsets = [0, 5], sizes = [8, 1], strides = [1, 1]} : vector<8x8xf32> to vector<8x1xf32>
    %153 = vector.broadcast %152 : vector<8x1xf32> to vector<8x96xf32>
    %154 = vector.broadcast %0 : vector<1x96xf32> to vector<8x96xf32>
    %155 = arith.mulf %153, %154 : vector<8x96xf32>
    %cst_21 = arith.constant dense<0.000000e+00> : vector<8x96xf32>
    %156 = tpu.matmul %151, %1, %cst_21 {dimension_numbers = #tpu.dot_dimension_numbers<[1], [0], [0], [1], [0, 0, 1, 1], [], []>} : vector<8x32xf32>, vector<32x96xf32>, vector<8x96xf32> -> vector<8x96xf32>
    %157 = vector.extract_strided_slice %155 {offsets = [0, 0], sizes = [8, 64], strides = [1, 1]} : vector<8x96xf32> to vector<8x64xf32>
    %158 = vector.extract_strided_slice %156 {offsets = [0, 0], sizes = [8, 64], strides = [1, 1]} : vector<8x96xf32> to vector<8x64xf32>
    %159 = arith.addf %157, %158 : vector<8x64xf32>
    %160 = vector.broadcast %2 : vector<1x64xf32> to vector<8x64xf32>
    %161 = arith.addf %159, %160 : vector<8x64xf32>
    %162 = arith.negf %161 : vector<8x64xf32>
    %163 = math.exp %162 : vector<8x64xf32>
    %cst_22 = arith.constant 1.000000e+00 : f32
    %164 = vector.broadcast %cst_22 : f32 to vector<8x64xf32>
    %165 = arith.addf %164, %163 : vector<8x64xf32>
    %166 = arith.divf %164, %165 : vector<8x64xf32>
    %167 = vector.extract_strided_slice %166 {offsets = [0, 0], sizes = [8, 32], strides = [1, 1]} : vector<8x64xf32> to vector<8x32xf32>
    %168 = vector.extract_strided_slice %166 {offsets = [0, 32], sizes = [8, 32], strides = [1, 1]} : vector<8x64xf32> to vector<8x32xf32>
    %169 = vector.extract_strided_slice %155 {offsets = [0, 64], sizes = [8, 32], strides = [1, 1]} : vector<8x96xf32> to vector<8x32xf32>
    %170 = vector.broadcast %3 : vector<1x32xf32> to vector<8x32xf32>
    %171 = arith.addf %169, %170 : vector<8x32xf32>
    %172 = vector.extract_strided_slice %156 {offsets = [0, 64], sizes = [8, 32], strides = [1, 1]} : vector<8x96xf32> to vector<8x32xf32>
    %173 = vector.broadcast %4 : vector<1x32xf32> to vector<8x32xf32>
    %174 = arith.addf %172, %173 : vector<8x32xf32>
    %175 = arith.mulf %167, %174 : vector<8x32xf32>
    %176 = arith.addf %171, %175 : vector<8x32xf32>
    %177 = math.tanh %176 : vector<8x32xf32>
    %178 = arith.subf %151, %177 : vector<8x32xf32>
    %179 = arith.mulf %168, %178 : vector<8x32xf32>
    %180 = arith.addf %177, %179 : vector<8x32xf32>
    %181 = vector.extract_strided_slice %6 {offsets = [0, 6], sizes = [8, 1], strides = [1, 1]} : vector<8x8xf32> to vector<8x1xf32>
    %182 = vector.broadcast %181 : vector<8x1xf32> to vector<8x96xf32>
    %183 = vector.broadcast %0 : vector<1x96xf32> to vector<8x96xf32>
    %184 = arith.mulf %182, %183 : vector<8x96xf32>
    %cst_23 = arith.constant dense<0.000000e+00> : vector<8x96xf32>
    %185 = tpu.matmul %180, %1, %cst_23 {dimension_numbers = #tpu.dot_dimension_numbers<[1], [0], [0], [1], [0, 0, 1, 1], [], []>} : vector<8x32xf32>, vector<32x96xf32>, vector<8x96xf32> -> vector<8x96xf32>
    %186 = vector.extract_strided_slice %184 {offsets = [0, 0], sizes = [8, 64], strides = [1, 1]} : vector<8x96xf32> to vector<8x64xf32>
    %187 = vector.extract_strided_slice %185 {offsets = [0, 0], sizes = [8, 64], strides = [1, 1]} : vector<8x96xf32> to vector<8x64xf32>
    %188 = arith.addf %186, %187 : vector<8x64xf32>
    %189 = vector.broadcast %2 : vector<1x64xf32> to vector<8x64xf32>
    %190 = arith.addf %188, %189 : vector<8x64xf32>
    %191 = arith.negf %190 : vector<8x64xf32>
    %192 = math.exp %191 : vector<8x64xf32>
    %cst_24 = arith.constant 1.000000e+00 : f32
    %193 = vector.broadcast %cst_24 : f32 to vector<8x64xf32>
    %194 = arith.addf %193, %192 : vector<8x64xf32>
    %195 = arith.divf %193, %194 : vector<8x64xf32>
    %196 = vector.extract_strided_slice %195 {offsets = [0, 0], sizes = [8, 32], strides = [1, 1]} : vector<8x64xf32> to vector<8x32xf32>
    %197 = vector.extract_strided_slice %195 {offsets = [0, 32], sizes = [8, 32], strides = [1, 1]} : vector<8x64xf32> to vector<8x32xf32>
    %198 = vector.extract_strided_slice %184 {offsets = [0, 64], sizes = [8, 32], strides = [1, 1]} : vector<8x96xf32> to vector<8x32xf32>
    %199 = vector.broadcast %3 : vector<1x32xf32> to vector<8x32xf32>
    %200 = arith.addf %198, %199 : vector<8x32xf32>
    %201 = vector.extract_strided_slice %185 {offsets = [0, 64], sizes = [8, 32], strides = [1, 1]} : vector<8x96xf32> to vector<8x32xf32>
    %202 = vector.broadcast %4 : vector<1x32xf32> to vector<8x32xf32>
    %203 = arith.addf %201, %202 : vector<8x32xf32>
    %204 = arith.mulf %196, %203 : vector<8x32xf32>
    %205 = arith.addf %200, %204 : vector<8x32xf32>
    %206 = math.tanh %205 : vector<8x32xf32>
    %207 = arith.subf %180, %206 : vector<8x32xf32>
    %208 = arith.mulf %197, %207 : vector<8x32xf32>
    %209 = arith.addf %206, %208 : vector<8x32xf32>
    %210 = vector.extract_strided_slice %6 {offsets = [0, 7], sizes = [8, 1], strides = [1, 1]} : vector<8x8xf32> to vector<8x1xf32>
    %211 = vector.broadcast %210 : vector<8x1xf32> to vector<8x96xf32>
    %212 = vector.broadcast %0 : vector<1x96xf32> to vector<8x96xf32>
    %213 = arith.mulf %211, %212 : vector<8x96xf32>
    %cst_25 = arith.constant dense<0.000000e+00> : vector<8x96xf32>
    %214 = tpu.matmul %209, %1, %cst_25 {dimension_numbers = #tpu.dot_dimension_numbers<[1], [0], [0], [1], [0, 0, 1, 1], [], []>} : vector<8x32xf32>, vector<32x96xf32>, vector<8x96xf32> -> vector<8x96xf32>
    %215 = vector.extract_strided_slice %213 {offsets = [0, 0], sizes = [8, 64], strides = [1, 1]} : vector<8x96xf32> to vector<8x64xf32>
    %216 = vector.extract_strided_slice %214 {offsets = [0, 0], sizes = [8, 64], strides = [1, 1]} : vector<8x96xf32> to vector<8x64xf32>
    %217 = arith.addf %215, %216 : vector<8x64xf32>
    %218 = vector.broadcast %2 : vector<1x64xf32> to vector<8x64xf32>
    %219 = arith.addf %217, %218 : vector<8x64xf32>
    %220 = arith.negf %219 : vector<8x64xf32>
    %221 = math.exp %220 : vector<8x64xf32>
    %cst_26 = arith.constant 1.000000e+00 : f32
    %222 = vector.broadcast %cst_26 : f32 to vector<8x64xf32>
    %223 = arith.addf %222, %221 : vector<8x64xf32>
    %224 = arith.divf %222, %223 : vector<8x64xf32>
    %225 = vector.extract_strided_slice %224 {offsets = [0, 0], sizes = [8, 32], strides = [1, 1]} : vector<8x64xf32> to vector<8x32xf32>
    %226 = vector.extract_strided_slice %224 {offsets = [0, 32], sizes = [8, 32], strides = [1, 1]} : vector<8x64xf32> to vector<8x32xf32>
    %227 = vector.extract_strided_slice %213 {offsets = [0, 64], sizes = [8, 32], strides = [1, 1]} : vector<8x96xf32> to vector<8x32xf32>
    %228 = vector.broadcast %3 : vector<1x32xf32> to vector<8x32xf32>
    %229 = arith.addf %227, %228 : vector<8x32xf32>
    %230 = vector.extract_strided_slice %214 {offsets = [0, 64], sizes = [8, 32], strides = [1, 1]} : vector<8x96xf32> to vector<8x32xf32>
    %231 = vector.broadcast %4 : vector<1x32xf32> to vector<8x32xf32>
    %232 = arith.addf %230, %231 : vector<8x32xf32>
    %233 = arith.mulf %225, %232 : vector<8x32xf32>
    %234 = arith.addf %229, %233 : vector<8x32xf32>
    %235 = math.tanh %234 : vector<8x32xf32>
    %236 = arith.subf %209, %235 : vector<8x32xf32>
    %237 = arith.mulf %226, %236 : vector<8x32xf32>
    %238 = arith.addf %235, %237 : vector<8x32xf32>
    %c0_27 = arith.constant 0 : index
    %c0_28 = arith.constant 0 : index
    %239 = vector.load %arg7[%c0_27, %c0_28] : memref<32x4xf32, #tpu.memory_space<vmem>>, vector<32x4xf32>
    %cst_29 = arith.constant dense<0.000000e+00> : vector<8x4xf32>
    %240 = tpu.matmul %238, %239, %cst_29 {dimension_numbers = #tpu.dot_dimension_numbers<[1], [0], [0], [1], [0, 0, 1, 1], [], []>} : vector<8x32xf32>, vector<32x4xf32>, vector<8x4xf32> -> vector<8x4xf32>
    %c0_30 = arith.constant 0 : index
    %c0_31 = arith.constant 0 : index
    %241 = vector.load %arg8[%c0_30, %c0_31] : memref<1x4xf32, #tpu.memory_space<vmem>>, vector<1x4xf32>
    %242 = vector.broadcast %241 : vector<1x4xf32> to vector<8x4xf32>
    %243 = arith.addf %240, %242 : vector<8x4xf32>
    %c0_32 = arith.constant 0 : index
    %c0_33 = arith.constant 0 : index
    %244 = vector.load %arg9[%c0_32, %c0_33] : memref<8x4xf32, #tpu.memory_space<vmem>>, vector<8x4xf32>
    tpu.vector_store %arg9[%c0_32, %c0_33], %243 {strides = array<i32>} : memref<8x4xf32, #tpu.memory_space<vmem>>, vector<8x4xf32>,
    return
  }
  func.func @transform_0(%arg0: i32) -> (i32, i32) {
    %c0_i32 = arith.constant 0 : i32
    %c0_i32_0 = arith.constant 0 : i32
    return %arg0, %c0_i32 : i32, i32
  }
  func.func @transform_1(%arg0: i32) -> (i32, i32) {
    %c0_i32 = arith.constant 0 : i32
    %c0_i32_0 = arith.constant 0 : i32
    %c0_i32_1 = arith.constant 0 : i32
    return %c0_i32, %c0_i32_0 : i32, i32
  }
  func.func @transform_2(%arg0: i32) -> (i32, i32) {
    %c0_i32 = arith.constant 0 : i32
    %c0_i32_0 = arith.constant 0 : i32
    %c0_i32_1 = arith.constant 0 : i32
    return %c0_i32, %c0_i32_0 : i32, i32
  }
  func.func @transform_3(%arg0: i32) -> (i32, i32) {
    %c0_i32 = arith.constant 0 : i32
    %c0_i32_0 = arith.constant 0 : i32
    %c0_i32_1 = arith.constant 0 : i32
    return %c0_i32, %c0_i32_0 : i32, i32
  }
  func.func @transform_4(%arg0: i32) -> (i32, i32) {
    %c0_i32 = arith.constant 0 : i32
    %c0_i32_0 = arith.constant 0 : i32
    %c0_i32_1 = arith.constant 0 : i32
    return %c0_i32, %c0_i32_0 : i32, i32
  }
  func.func @transform_5(%arg0: i32) -> (i32, i32) {
    %c0_i32 = arith.constant 0 : i32
    %c0_i32_0 = arith.constant 0 : i32
    %c0_i32_1 = arith.constant 0 : i32
    return %c0_i32, %c0_i32_0 : i32, i32
  }
  func.func @transform_6(%arg0: i32) -> (i32, i32) {
    %c0_i32 = arith.constant 0 : i32
    %c0_i32_0 = arith.constant 0 : i32
    %c0_i32_1 = arith.constant 0 : i32
    return %c0_i32, %c0_i32_0 : i32, i32
  }
  func.func @transform_7(%arg0: i32) -> (i32, i32) {
    %c0_i32 = arith.constant 0 : i32
    %c0_i32_0 = arith.constant 0 : i32
    %c0_i32_1 = arith.constant 0 : i32
    return %c0_i32, %c0_i32_0 : i32, i32
  }
  func.func @transform_8(%arg0: i32) -> (i32, i32) {
    %c0_i32 = arith.constant 0 : i32
    %c0_i32_0 = arith.constant 0 : i32
    return %arg0, %c0_i32 : i32, i32
  }
}

</mosaic_0001>

<bundles_post_ra>
// kernel: model_forward.1
= control target key start
LH: loop header
LB: loop body
LE: loop exit
PB: predicated region body
PF: predicated region fallthrough
CT: control target
= control target key end

     0   :  { %v1344_v0 = vmov 0.0|0.0   ;;  %vm1345_vm0 = vmmov 0   ;;  %v1346_v4 = vmov 0.0   ;;  %v1347_v8 = vmov 0   ;;  %s1348_s15 = smov 64   ;;  %s1605_s2 = inlined_call_operand.vmem [shape: f32[32,96], index: 2, kind: input, shape index: {}]   ;;  %s1606_s5 = inlined_call_operand.vmem [shape: f32[1,32], index: 5, kind: input, shape index: {}]   ;;  %s1607_s0 = inlined_call_operand.vmem [shape: f32[8,8], index: 0, kind: input, shape index: {}]   ;;  %s1608_s4 = inlined_call_operand.vmem [shape: f32[1,32], index: 4, kind: input, shape index: {}]   ;;  %s1609_s1 = inlined_call_operand.vmem [shape: f32[1,96], index: 1, kind: input, shape index: {}]   ;;  %s1610_s3 = inlined_call_operand.vmem [shape: f32[1,64], index: 3, kind: input, shape index: {}]   ;;  %s1611_s6 = inlined_call_operand.vmem [shape: f32[32,4], index: 6, kind: input, shape index: {}]   ;;  %s1612_s7 = inlined_call_operand.vmem [shape: f32[1,4], index: 7, kind: input, shape index: {}]   ;;  %s1613_s8 = inlined_call_operand.vmem [shape: f32[8,4], index: 8, kind: output, shape index: {}]  }
   0x1   :  { %1219 = vmatprep.subr.bf16.mxu0 %v1344_v0  ;;  %v30_v1 = vld [vmem:[%s1605_s2] sm:$0xff]  ;;  %v31_v2 = vld [vmem:[%s1605_s2 + $0x8] sm:$0xff]  ;;  %v32_v3 = vld [vmem:[%s1605_s2 + $0x10] sm:$0xff]  ;;  %1128 = vmatprep.mubr.msk.f32.mxu0 %vm1345_vm0, %v1346_v4  ;;  %v1349_v32 = vmov 1   ;;  %vm50_vm1 = vcmask 261120   ;;  %v1352_v56 = vmov 2  }
   0x2   :  { %v1415_v5 = vpack.c.bf16 %v31_v2, %v30_v1  ;;  %v33_v6 = vld [vmem:[%s1605_s2 + $0x18] sm:$0xff]  ;;  %v1058_v7 = vld [vmem:[%s1606_s5] ss:$0 sm:$0xff]  ;;  %1287 = vset.pattern.permute.xlu0 %v1347_v8  ;;  %1225 = vmatprep.subr.bf16.mxu1 %v1344_v0  ;;  %vm1048_vm2 = vcmask 31744  }
   0x3   :  { %152 = vrot.lane.b32.xlu0 %v1058_v7, %s1348_s15  ;;  %1139 = vmatprep.mubr.msk.f32.mxu1 %vm1345_vm0, %v1346_v4  ;;  %v1428_v9 = vpack.c.bf16 %v33_v6, %v32_v3  ;;  %v1433_v10 = vld [vmem:[%s1607_s0] sm:$0xff] }
   0x4   :  { %1221 = vmatpush3.bf16.msra.mxu0 %v1415_v5  ;;  %1227 = vmatpush3.bf16.msra.mxu1 %v1415_v5  ;;  %v1057_v15 = vld [vmem:[%s1608_s4] ss:$0 sm:$0xff] }
   0x5   :  { %1222 = vmatprep.subr.bf16.mxu0 %v1344_v0  ;;  %1228 = vmatprep.subr.bf16.mxu1 %v1344_v0  ;;  %v1461_v16 = vld [vmem:[%s1609_s1] ss:$0 sm:$0xff]  ;;  %s1350_s1 = smov 96  }
   0x6   :  { %v1467_v20 = vld [vmem:[%s1610_s3] ss:$0 sm:$0xff]  ;;  %1288 = vset.pattern.permute.xlu1 %v1349_v32  ;;  %s1351_s3 = smov 32  }
   0x7   :  { %40 = vperm.xlu0 %1287, %v1433_v10  }
   0x8   :  { %1224 = vmatpush3.bf16.msra.mxu0 %v1428_v9  ;;  %1230 = vmatpush3.bf16.msra.mxu1 %v1428_v9 }
   0x9   :  { %1231 = vmatprep.subr.bf16.mxu0 %v1344_v0  ;;  %1237 = vmatprep.subr.bf16.mxu1 %v1344_v0 }
   0xb   :  { %1129 = vmatmul.mubr.f32.vlgmr.msra.gmra.mrb[0].mxu0 %v1346_v4 }
   0xc   :  { %1233 = vmatpush3.bf16.msra.mxu0 %v1415_v5  ;;  %1150 = vmatprep.mubr.msk.f32.mxu0 %vm1345_vm0, %v1346_v4 }
   0xd   :  { %1234 = vmatprep.subr.bf16.mxu0 %v1344_v0 }
  0x10   :  { %1236 = vmatpush3.bf16.msra.mxu0 %v1428_v9 }
  0x11   :  { %1243 = vmatprep.subr.bf16.mxu0 %v1344_v0 }
  0x75   :  { %v1450_v11 = vpop.permute.xlu0 %152 }
  0x86   :  { %v41_v17 = vpop.permute.xlu0 %40 }
  0x87   :  { %v49_v18 = vmul.f32 %v1461_v16, %v41_v17 }
  0xde   :  { %v120_v12 = vpop.f32.mrb[0].mxu0 }
  0xdf   :  { %v1130_v13 = vpop.f32.mrb[1].mxu0  ;;  %v155_v14 = vadd.f32 %v1450_v11, %v120_v12  ;;  %v124_v19 = vadd.f32 %v120_v12, %v49_v18 }
  0xe1   :  { %157 = vrot.lane.b32.xlu1 %v155_v14, %s1348_s15  ;;  %v131_v21 = vadd.f32 %v1467_v20, %v124_v19 }
  0xe3   :  { %v1056_v22 = vmul.f32 -1.442695, %v131_v21 }
  0xe5   :  { %143 = vrot.lane.b32.xlu1 %v1057_v15, %s1348_s15  ;;  %1296 = vpow2.f32 %v1056_v22 }
  0xef   :  { %v1297_v23 = vpop.eup %1296 }
  0xf0   :  { %v135_v24 = vadd.f32 1.0, %v1297_v23 }
  0xf2   :  { %1298 = vrcp.f32 %v135_v24  ;;  %v1353_v24 = vmov 3  }
  0xfc   :  { %v1299_v25 = vpop.eup %1298 }
 0x153   :  { %v158_v26 = vpop.permute.xlu1 %157 }
 0x154   :  { %v160_v27 = vmul.f32 %v1299_v25, %v158_v26 }
 0x156   :  { %162 = vrot.lane.b32.xlu1 %v160_v27, %s1348_s15 }
 0x157   :  { %v1471_v28 = vpop.permute.xlu1 %143 }
 0x158   :  { %v146_v29 = vadd.f32 %v1471_v28, %v49_v18 }
 0x1c8   :  { %v163_v30 = vpop.permute.xlu1 %162 }
 0x1c9   :  { %v165_v31 = vadd.f32 %v163_v30, %v146_v29 }
 0x1cb   :  { %1300 = vtanh.f32 %v165_v31 }
 0x1d5   :  { %v1301_v33 = vpop.eup %1300 }
 0x1d6   :  { %v167_v34 = vsub.f32 0.0, %v1301_v33 }
 0x1d8   :  { %169 = vrot.lane.b32.xlu0 %v167_v34, %s1350_s1 }
 0x24a   :  { %v170_v35 = vpop.permute.xlu0 %169 }
 0x24b   :  { %v172_v36 = vmul.f32 %v1299_v25, %v170_v35 }
 0x24d   :  { %174 = vrot.lane.b32.xlu1 %v172_v36, %s1351_s3 }
 0x251   :  { %179 = vperm.xlu1 %1288, %v1433_v10  }
 0x255   :  { %1289 = vset.pattern.permute.xlu1 %v1352_v56 }
 0x2bf   :  { %v175_v37 = vpop.permute.xlu1 %174 }
 0x2c0   :  { %v177_v38 = vadd.f32 %v1301_v33, %v175_v37 }
 0x2c2   :  { %184 = vrot.lane.b32.xlu0 %v177_v38, %s1348_s15 }
 0x2d0   :  { %v180_v43 = vpop.permute.xlu1 %179 }
 0x2d1   :  { %v182_v44 = vmul.f32 %v1461_v16, %v180_v43 }
 0x2d3   :  { %v266_v53 = vadd.f32 %v182_v44, %v1471_v28 }
 0x334   :  { %v185_v39 = vpop.permute.xlu0 %184 }
 0x335   :  { %1140 = vmatmul.mubr.msk.f32.vlgmr.msra.gmra.mrb[0].mxu1 %vm50_vm1, %v185_v39 }
 0x336   :  { %1239 = vmatpush3.bf16.msra.mxu1 %v1415_v5  ;;  %1161 = vmatprep.mubr.msk.f32.mxu1 %vm1345_vm0, %v1346_v4 }
 0x337   :  { %1240 = vmatprep.subr.bf16.mxu1 %v1344_v0 }
 0x33a   :  { %1242 = vmatpush3.bf16.msra.mxu1 %v1428_v9 }
 0x33b   :  { %1249 = vmatprep.subr.bf16.mxu1 %v1344_v0 }
 0x408   :  { %v254_v40 = vpop.f32.mrb[0].mxu1 }
 0x409   :  { %v267_v41 = vadd.f32 %v254_v40, %v1450_v11  ;;  %v1141_v42 = vpop.f32.mrb[1].mxu1  ;;  %v258_v45 = vadd.f32 %v254_v40, %v182_v44 }
 0x40b   :  { %269 = vrot.lane.b32.xlu0 %v267_v41, %s1348_s15  ;;  %v259_v46 = vadd.f32 %v1467_v20, %v258_v45 }
 0x40d   :  { %v1060_v47 = vmul.f32 -1.442695, %v259_v46 }
 0x40f   :  { %1302 = vpow2.f32 %v1060_v47 }
 0x419   :  { %v1303_v48 = vpop.eup %1302 }
 0x41a   :  { %v263_v49 = vadd.f32 1.0, %v1303_v48 }
 0x41c   :  { %1304 = vrcp.f32 %v263_v49  ;;  %v1354_v49 = vmov 4  }
 0x426   :  { %v1305_v50 = vpop.eup %1304 }
 0x47d   :  { %v270_v51 = vpop.permute.xlu0 %269 }
 0x47e   :  { %v272_v52 = vmul.f32 %v1305_v50, %v270_v51 }
 0x480   :  { %274 = vrot.lane.b32.xlu1 %v272_v52, %s1348_s15 }
 0x4f2   :  { %v275_v54 = vpop.permute.xlu1 %274 }
 0x4f3   :  { %v277_v55 = vadd.f32 %v275_v54, %v266_v53 }
 0x4f5   :  { %1306 = vtanh.f32 %v277_v55 }
 0x4ff   :  { %v1307_v57 = vpop.eup %1306 }
 0x500   :  { %v279_v58 = vsub.f32 %v177_v38, %v1307_v57 }
 0x502   :  { %281 = vrot.lane.b32.xlu0 %v279_v58, %s1350_s1 }
 0x574   :  { %v282_v59 = vpop.permute.xlu0 %281 }
 0x575   :  { %v284_v60 = vmul.f32 %v1305_v50, %v282_v59 }
 0x577   :  { %286 = vrot.lane.b32.xlu1 %v284_v60, %s1351_s3 }
 0x57b   :  { %291 = vperm.xlu1 %1289, %v1433_v10  }
 0x57f   :  { %1290 = vset.pattern.permute.xlu1 %v1353_v24 }
 0x5e9   :  { %v287_v61 = vpop.permute.xlu1 %286 }
 0x5ea   :  { %v289_v62 = vadd.f32 %v1307_v57, %v287_v61 }
 0x5ec   :  { %296 = vrot.lane.b32.xlu0 %v289_v62, %s1348_s15 }
 0x5fa   :  { %v292_v6 = vpop.permute.xlu1 %291 }
 0x5fb   :  { %v294_v7 = vmul.f32 %v1461_v16, %v292_v6 }
 0x5fd   :  { %v378_v21 = vadd.f32 %v294_v7, %v1471_v28 }
 0x65e   :  { %v297_v63 = vpop.permute.xlu0 %296 }
 0x65f   :  { %1151 = vmatmul.mubr.msk.f32.vlgmr.msra.gmra.mrb[2].mxu0 %vm50_vm1, %v297_v63 }
 0x660   :  { %1245 = vmatpush3.bf16.msra.mxu0 %v1415_v5  ;;  %1172 = vmatprep.mubr.msk.f32.mxu0 %vm1345_vm0, %v1346_v4 }
 0x661   :  { %1246 = vmatprep.subr.bf16.mxu0 %v1344_v0 }
 0x664   :  { %1248 = vmatpush3.bf16.msra.mxu0 %v1428_v9 }
 0x665   :  { %1255 = vmatprep.subr.bf16.mxu0 %v1344_v0 }
 0x732   :  { %v366_v1 = vpop.f32.mrb[2].mxu0 }
 0x733   :  { %v379_v2 = vadd.f32 %v366_v1, %v1450_v11  ;;  %v1152_v3 = vpop.f32.mrb[3].mxu0  ;;  %v370_v8 = vadd.f32 %v366_v1, %v294_v7 }
 0x735   :  { %381 = vrot.lane.b32.xlu0 %v379_v2, %s1348_s15  ;;  %v371_v12 = vadd.f32 %v1467_v20, %v370_v8 }
 0x737   :  { %v1062_v13 = vmul.f32 -1.442695, %v371_v12 }
 0x739   :  { %1308 = vpow2.f32 %v1062_v13 }
 0x743   :  { %v1309_v14 = vpop.eup %1308 }
 0x744   :  { %v375_v15 = vadd.f32 1.0, %v1309_v14 }
 0x746   :  { %1310 = vrcp.f32 %v375_v15  ;;  %v1355_v15 = vmov 5  }
 0x750   :  { %v1311_v17 = vpop.eup %1310 }
 0x7a7   :  { %v382_v18 = vpop.permute.xlu0 %381 }
 0x7a8   :  { %v384_v19 = vmul.f32 %v1311_v17, %v382_v18 }
 0x7aa   :  { %386 = vrot.lane.b32.xlu1 %v384_v19, %s1348_s15 }
 0x81c   :  { %v387_v22 = vpop.permute.xlu1 %386 }
 0x81d   :  { %v389_v23 = vadd.f32 %v387_v22, %v378_v21 }
 0x81f   :  { %1312 = vtanh.f32 %v389_v23 }
 0x829   :  { %v1313_v25 = vpop.eup %1312 }
 0x82a   :  { %v391_v26 = vsub.f32 %v289_v62, %v1313_v25 }
 0x82c   :  { %393 = vrot.lane.b32.xlu0 %v391_v26, %s1350_s1 }
 0x89e   :  { %v394_v27 = vpop.permute.xlu0 %393 }
 0x89f   :  { %v396_v29 = vmul.f32 %v1311_v17, %v394_v27 }
 0x8a1   :  { %398 = vrot.lane.b32.xlu1 %v396_v29, %s1351_s3 }
 0x8a5   :  { %403 = vperm.xlu1 %1290, %v1433_v10  }
 0x8a9   :  { %1291 = vset.pattern.permute.xlu1 %v1354_v49 }
 0x913   :  { %v399_v30 = vpop.permute.xlu1 %398 }
 0x914   :  { %v401_v31 = vadd.f32 %v1313_v25, %v399_v30 }
 0x916   :  { %408 = vrot.lane.b32.xlu0 %v401_v31, %s1348_s15 }
 0x924   :  { %v404_v36 = vpop.permute.xlu1 %403 }
 0x925   :  { %v406_v37 = vmul.f32 %v1461_v16, %v404_v36 }
 0x927   :  { %v490_v46 = vadd.f32 %v406_v37, %v1471_v28 }
 0x988   :  { %v409_v32 = vpop.permute.xlu0 %408 }
 0x989   :  { %1162 = vmatmul.mubr.msk.f32.vlgmr.msra.gmra.mrb[2].mxu1 %vm50_vm1, %v409_v32 }
 0x98a   :  { %1251 = vmatpush3.bf16.msra.mxu1 %v1415_v5  ;;  %1183 = vmatprep.mubr.msk.f32.mxu1 %vm1345_vm0, %v1346_v4 }
 0x98b   :  { %1252 = vmatprep.subr.bf16.mxu1 %v1344_v0 }
 0x98e   :  { %1254 = vmatpush3.bf16.msra.mxu1 %v1428_v9 }
 0x98f   :  { %1261 = vmatprep.subr.bf16.mxu1 %v1344_v0 }
 0xa5c   :  { %v478_v33 = vpop.f32.mrb[2].mxu1 }
 0xa5d   :  { %v491_v34 = vadd.f32 %v478_v33, %v1450_v11  ;;  %v1163_v35 = vpop.f32.mrb[3].mxu1  ;;  %v482_v38 = vadd.f32 %v478_v33, %v406_v37 }
 0xa5f   :  { %493 = vrot.lane.b32.xlu0 %v491_v34, %s1348_s15  ;;  %v483_v39 = vadd.f32 %v1467_v20, %v482_v38 }
 0xa61   :  { %v1064_v40 = vmul.f32 -1.442695, %v483_v39 }
 0xa63   :  { %1314 = vpow2.f32 %v1064_v40  ;;  %v1356_v40 = vmov 6  }
 0xa6d   :  { %v1315_v41 = vpop.eup %1314 }
 0xa6e   :  { %v487_v42 = vadd.f32 1.0, %v1315_v41 }
 0xa70   :  { %1316 = vrcp.f32 %v487_v42 }
 0xa7a   :  { %v1317_v43 = vpop.eup %1316 }
 0xad1   :  { %v494_v44 = vpop.permute.xlu0 %493 }
 0xad2   :  { %v496_v45 = vmul.f32 %v1317_v43, %v494_v44 }
 0xad4   :  { %498 = vrot.lane.b32.xlu1 %v496_v45, %s1348_s15 }
 0xb46   :  { %v499_v47 = vpop.permute.xlu1 %498 }
 0xb47   :  { %v501_v48 = vadd.f32 %v499_v47, %v490_v46 }
 0xb49   :  { %1318 = vtanh.f32 %v501_v48 }
 0xb53   :  { %v1319_v50 = vpop.eup %1318 }
 0xb54   :  { %v503_v51 = vsub.f32 %v401_v31, %v1319_v50 }
 0xb56   :  { %505 = vrot.lane.b32.xlu0 %v503_v51, %s1350_s1 }
 0xbc8   :  { %v506_v52 = vpop.permute.xlu0 %505 }
 0xbc9   :  { %v508_v53 = vmul.f32 %v1317_v43, %v506_v52 }
 0xbcb   :  { %510 = vrot.lane.b32.xlu1 %v508_v53, %s1351_s3 }
 0xbcf   :  { %515 = vperm.xlu1 %1291, %v1433_v10  }
 0xbd3   :  { %1292 = vset.pattern.permute.xlu1 %v1355_v15 }
 0xc3d   :  { %v511_v54 = vpop.permute.xlu1 %510 }
 0xc3e   :  { %v513_v55 = vadd.f32 %v1319_v50, %v511_v54 }
 0xc40   :  { %520 = vrot.lane.b32.xlu0 %v513_v55, %s1348_s15 }
 0xc4e   :  { %v516_v60 = vpop.permute.xlu1 %515 }
 0xc4f   :  { %v518_v61 = vmul.f32 %v1461_v16, %v516_v60 }
 0xc51   :  { %v602_v12 = vadd.f32 %v518_v61, %v1471_v28 }
 0xcb2   :  { %v521_v56 = vpop.permute.xlu0 %520 }
 0xcb3   :  { %1173 = vmatmul.mubr.msk.f32.vlgmr.msra.gmra.mrb[4].mxu0 %vm50_vm1, %v521_v56 }
 0xcb4   :  { %1257 = vmatpush3.bf16.msra.mxu0 %v1415_v5  ;;  %1194 = vmatprep.mubr.msk.f32.mxu0 %vm1345_vm0, %v1346_v4 }
 0xcb5   :  { %1258 = vmatprep.subr.bf16.mxu0 %v1344_v0 }
 0xcb8   :  { %1260 = vmatpush3.bf16.msra.mxu0 %v1428_v9 }
 0xcb9   :  { %1267 = vmatprep.subr.bf16.mxu0 %v1344_v0 }
 0xd86   :  { %v590_v57 = vpop.f32.mrb[4].mxu0 }
 0xd87   :  { %v603_v58 = vadd.f32 %v590_v57, %v1450_v11  ;;  %v1174_v59 = vpop.f32.mrb[5].mxu0  ;;  %v594_v62 = vadd.f32 %v590_v57, %v518_v61 }
 0xd89   :  { %605 = vrot.lane.b32.xlu0 %v603_v58, %s1348_s15  ;;  %v595_v63 = vadd.f32 %v1467_v20, %v594_v62 }
 0xd8b   :  { %v1066_v1 = vmul.f32 -1.442695, %v595_v63  ;;  %v1357_v63 = vmov 7  }
 0xd8c   :  { %1295 = vset.pattern.permute.xlu0 %v1357_v63 }
 0xd8d   :  { %1320 = vpow2.f32 %v1066_v1 }
 0xd97   :  { %v1321_v2 = vpop.eup %1320 }
 0xd98   :  { %v599_v3 = vadd.f32 1.0, %v1321_v2 }
 0xd9a   :  { %1322 = vrcp.f32 %v599_v3 }
 0xda4   :  { %v1323_v6 = vpop.eup %1322 }
 0xdfb   :  { %v606_v7 = vpop.permute.xlu0 %605 }
 0xdfc   :  { %v608_v8 = vmul.f32 %v1323_v6, %v606_v7 }
 0xdfe   :  { %610 = vrot.lane.b32.xlu1 %v608_v8, %s1348_s15 }
 0xe70   :  { %v611_v13 = vpop.permute.xlu1 %610 }
 0xe71   :  { %v613_v14 = vadd.f32 %v611_v13, %v602_v12 }
 0xe73   :  { %1324 = vtanh.f32 %v613_v14 }
 0xe7d   :  { %v1325_v17 = vpop.eup %1324 }
 0xe7e   :  { %v615_v18 = vsub.f32 %v513_v55, %v1325_v17 }
 0xe80   :  { %617 = vrot.lane.b32.xlu0 %v615_v18, %s1350_s1 }
 0xef2   :  { %v618_v19 = vpop.permute.xlu0 %617 }
 0xef3   :  { %v620_v21 = vmul.f32 %v1323_v6, %v618_v19 }
 0xef5   :  { %622 = vrot.lane.b32.xlu1 %v620_v21, %s1351_s3 }
 0xef9   :  { %627 = vperm.xlu1 %1292, %v1433_v10  }
 0xefd   :  { %1293 = vset.pattern.permute.xlu1 %v1356_v40 }
 0xf67   :  { %v623_v22 = vpop.permute.xlu1 %622 }
 0xf68   :  { %v625_v23 = vadd.f32 %v1325_v17, %v623_v22 }
 0xf6a   :  { %632 = vrot.lane.b32.xlu0 %v625_v23, %s1348_s15 }
 0xf78   :  { %v628_v29 = vpop.permute.xlu1 %627 }
 0xf79   :  { %v630_v30 = vmul.f32 %v1461_v16, %v628_v29 }
 0xf7b   :  { %v714_v37 = vadd.f32 %v630_v30, %v1471_v28 }
 0xfdc   :  { %v633_v24 = vpop.permute.xlu0 %632 }
 0xfdd   :  { %1184 = vmatmul.mubr.msk.f32.vlgmr.msra.gmra.mrb[4].mxu1 %vm50_vm1, %v633_v24 }
 0xfde   :  { %1263 = vmatpush3.bf16.msra.mxu1 %v1415_v5  ;;  %1205 = vmatprep.mubr.msk.f32.mxu1 %vm1345_vm0, %v1346_v4 }
 0xfdf   :  { %1264 = vmatprep.subr.bf16.mxu1 %v1344_v0 }
 0xfe2   :  { %1266 = vmatpush3.bf16.msra.mxu1 %v1428_v9 }
0x10b0   :  { %v702_v25 = vpop.f32.mrb[4].mxu1 }
0x10b1   :  { %v715_v26 = vadd.f32 %v702_v25, %v1450_v11  ;;  %v1185_v27 = vpop.f32.mrb[5].mxu1  ;;  %v706_v31 = vadd.f32 %v702_v25, %v630_v30 }
0x10b3   :  { %717 = vrot.lane.b32.xlu0 %v715_v26, %s1348_s15  ;;  %v707_v32 = vadd.f32 %v1467_v20, %v706_v31  ;;  %v963_v31 = vld [vmem:[%s1611_s6 + $0x8] sm:$0xff] }
0x10b5   :  { %v1068_v5 = vmul.f32 -1.442695, %v707_v32  ;;  %v964_v32 = vld [vmem:[%s1611_s6 + $0x10] sm:$0xff] }
0x10b7   :  { %1326 = vpow2.f32 %v1068_v5  ;;  %v965_v5 = vld [vmem:[%s1611_s6 + $0x18] sm:$0xff] }
0x10c1   :  { %v1327_v33 = vpop.eup %1326 }
0x10c2   :  { %v711_v34 = vadd.f32 1.0, %v1327_v33  ;;  %v1271_v33 = vpack.c.bf16 %v965_v5, %v964_v32 }
0x10c4   :  { %1328 = vrcp.f32 %v711_v34 }
0x10ce   :  { %v1329_v35 = vpop.eup %1328 }
0x1125   :  { %v718_v36 = vpop.permute.xlu0 %717 }
0x1126   :  { %v720_v9 = vmul.f32 %v1329_v35, %v718_v36 }
0x1128   :  { %722 = vrot.lane.b32.xlu1 %v720_v9, %s1348_s15 }
0x119a   :  { %v723_v38 = vpop.permute.xlu1 %722 }
0x119b   :  { %v725_v39 = vadd.f32 %v723_v38, %v714_v37  ;;  %v1073_v38 = vld [vmem:[%s1612_s7] ss:$0 sm:$0xff] }
0x119d   :  { %1330 = vtanh.f32 %v725_v39 }
0x11a7   :  { %v1331_v41 = vpop.eup %1330 }
0x11a8   :  { %v727_v42 = vsub.f32 %v625_v23, %v1331_v41 }
0x11aa   :  { %729 = vrot.lane.b32.xlu0 %v727_v42, %s1350_s1 }
0x121c   :  { %v730_v43 = vpop.permute.xlu0 %729 }
0x121d   :  { %v732_v44 = vmul.f32 %v1329_v35, %v730_v43 }
0x121f   :  { %734 = vrot.lane.b32.xlu1 %v732_v44, %s1351_s3 }
0x1223   :  { %739 = vperm.xlu1 %1293, %v1433_v10  }
0x1227   :  { %1294 = vset.pattern.permute.xlu1 %v1357_v63 }
0x1291   :  { %v735_v45 = vpop.permute.xlu1 %734 }
0x1292   :  { %v737_v46 = vadd.f32 %v1331_v41, %v735_v45 }
0x1294   :  { %744 = vrot.lane.b32.xlu0 %v737_v46, %s1348_s15 }
0x12a2   :  { %v740_v51 = vpop.permute.xlu1 %739 }
0x12a3   :  { %v742_v52 = vmul.f32 %v1461_v16, %v740_v51 }
0x12a5   :  { %v826_v60 = vadd.f32 %v742_v52, %v1471_v28 }
0x1306   :  { %v745_v47 = vpop.permute.xlu0 %744 }
0x1307   :  { %1195 = vmatmul.mubr.msk.f32.vlgmr.msra.gmra.mrb[6].mxu0 %vm50_vm1, %v745_v47 }
0x1308   :  { %1216 = vmatprep.mubr.msk.f32.mxu0 %vm1345_vm0, %v1346_v4 }
0x13da   :  { %v814_v48 = vpop.f32.mrb[6].mxu0 }
0x13db   :  { %v827_v49 = vadd.f32 %v814_v48, %v1450_v11  ;;  %v1196_v50 = vpop.f32.mrb[7].mxu0  ;;  %v818_v53 = vadd.f32 %v814_v48, %v742_v52 }
0x13dd   :  { %829 = vrot.lane.b32.xlu0 %v827_v49, %s1348_s15  ;;  %v819_v54 = vadd.f32 %v1467_v20, %v818_v53 }
0x13df   :  { %v1070_v55 = vmul.f32 -1.442695, %v819_v54 }
0x13e1   :  { %1332 = vpow2.f32 %v1070_v55 }
0x13eb   :  { %v1333_v56 = vpop.eup %1332 }
0x13ec   :  { %v823_v57 = vadd.f32 1.0, %v1333_v56 }
0x13ee   :  { %1334 = vrcp.f32 %v823_v57 }
0x13f8   :  { %v1335_v58 = vpop.eup %1334 }
0x144f   :  { %v830_v59 = vpop.permute.xlu0 %829 }
0x1450   :  { %v832_v4 = vmul.f32 %v1335_v58, %v830_v59 }
0x1452   :  { %834 = vrot.lane.b32.xlu1 %v832_v4, %s1348_s15 }
0x14c4   :  { %v835_v61 = vpop.permute.xlu1 %834 }
0x14c5   :  { %v837_v62 = vadd.f32 %v835_v61, %v826_v60 }
0x14c7   :  { %1336 = vtanh.f32 %v837_v62 }
0x14d1   :  { %v1337_v1 = vpop.eup %1336 }
0x14d2   :  { %v839_v2 = vsub.f32 %v737_v46, %v1337_v1 }
0x14d4   :  { %841 = vrot.lane.b32.xlu0 %v839_v2, %s1350_s1 }
0x1546   :  { %v842_v3 = vpop.permute.xlu0 %841 }
0x1547   :  { %v844_v6 = vmul.f32 %v1335_v58, %v842_v3 }
0x1549   :  { %846 = vrot.lane.b32.xlu1 %v844_v6, %s1351_s3 }
0x154d   :  { %851 = vperm.xlu1 %1294, %v1433_v10  }
0x15bb   :  { %v847_v7 = vpop.permute.xlu1 %846 }
0x15bc   :  { %v849_v8 = vadd.f32 %v1337_v1, %v847_v7 }
0x15be   :  { %856 = vrot.lane.b32.xlu0 %v849_v8, %s1348_s15 }
0x15cc   :  { %v852_v17 = vpop.permute.xlu1 %851 }
0x15cd   :  { %v854_v18 = vmul.f32 %v1461_v16, %v852_v17 }
0x1630   :  { %v857_v12 = vpop.permute.xlu0 %856 }
0x1631   :  { %1206 = vmatmul.mubr.msk.f32.vlgmr.msra.gmra.mrb[6].mxu1 %vm50_vm1, %v857_v12 }
0x1704   :  { %v926_v13 = vpop.f32.mrb[6].mxu1 }
0x1705   :  { %v939_v14 = vadd.f32 %v926_v13, %v1450_v11  ;;  %v1207_v15 = vpop.f32.mrb[7].mxu1  ;;  %v930_v19 = vadd.f32 %v926_v13, %v854_v18  ;;  %v938_v11 = vadd.f32 %v854_v18, %v1471_v28 }
0x1707   :  { %941 = vrot.lane.b32.xlu0 %v939_v14, %s1348_s15  ;;  %v931_v21 = vadd.f32 %v1467_v20, %v930_v19  ;;  %v962_v20 = vld [vmem:[%s1611_s6] sm:$0xff] }
0x1708   :  { %v1268_v28 = vpack.c.bf16 %v963_v31, %v962_v20 }
0x1709   :  { %v1072_v10 = vmul.f32 -1.442695, %v931_v21 }
0x170a   :  { %1269 = vmatpush3.bf16.msra.mxu0 %v1268_v28 }
0x170b   :  { %1338 = vpow2.f32 %v1072_v10  ;;  %1270 = vmatprep.subr.bf16.mxu0 %v1344_v0 }
0x170e   :  { %1272 = vmatpush3.bf16.msra.mxu0 %v1271_v33 }
0x1715   :  { %v1339_v22 = vpop.eup %1338 }
0x1716   :  { %v935_v23 = vadd.f32 1.0, %v1339_v22 }
0x1718   :  { %1340 = vrcp.f32 %v935_v23 }
0x1722   :  { %v1341_v24 = vpop.eup %1340 }
0x1779   :  { %v942_v25 = vpop.permute.xlu0 %941 }
0x177a   :  { %v944_v26 = vmul.f32 %v1341_v24, %v942_v25 }
0x177c   :  { %946 = vrot.lane.b32.xlu1 %v944_v26, %s1348_s15 }
0x17ee   :  { %v947_v27 = vpop.permute.xlu1 %946 }
0x17ef   :  { %v949_v29 = vadd.f32 %v947_v27, %v938_v11 }
0x17f1   :  { %1342 = vtanh.f32 %v949_v29 }
0x17fb   :  { %v1343_v30 = vpop.eup %1342 }
0x17fc   :  { %v951_v16 = vsub.f32 %v849_v8, %v1343_v30 }
0x17fe   :  { %953 = vrot.lane.b32.xlu0 %v951_v16, %s1350_s1 }
0x1870   :  { %v954_v34 = vpop.permute.xlu0 %953 }
0x1871   :  { %v956_v35 = vmul.f32 %v1341_v24, %v954_v34 }
0x1873   :  { %958 = vrot.lane.b32.xlu1 %v956_v35, %s1351_s3 }
0x18e5   :  { %v959_v36 = vpop.permute.xlu1 %958 }
0x18e6   :  { %v961_v9 = vadd.f32 %v1343_v30, %v959_v36 }
0x18e8   :  { %974 = vrot.lane.b32.xlu0 %v961_v9, %s1348_s15 }
0x195a   :  { %v975_v37 = vpop.permute.xlu0 %974 }
0x195b   :  { %1217 = vmatmul.mubr.msk.f32.vlgmr.msra.gmra.mrb[8].mxu0 %vm50_vm1, %v975_v37 }
0x1a2e   :  { %v1044_v39 = vpop.f32.mrb[8].mxu0 }
0x1a2f   :  { %v1045_v40 = vadd.f32 %v1073_v38, %v1044_v39  ;;  %v1218_v0 = vpop.f32.mrb[9].mxu0 }
0x1a31   :  { %1049 = vst.msk [vmem:[%s1613_s8] sm:$0xff] %vm1048_vm2, %v1045_v40 }

</bundles_post_ra>
